<compile_context>
chip_gen: v7x
topology: tpu7x:2x2x1
jax: 0.10.0
libtpu: 0.0.40
codegen_flags: <defaults>
</compile_context>

<pallas_src>
import jax
import jax.numpy as jnp
from jax import lax
from jax.experimental import pallas as pl
from jax.experimental.pallas import tpu as pltpu

# ---- module hyper-parameters (small demo values, consistent with the PyTorch module) ----
M_COUNT = 8          # metabolites        (module global m_count=20)
R_COUNT = 6          # reactions          (module global reactions_count=50)
ITERATIONS = 8       # Process_new iterations (module default 100)
MINIBATCH = 16       # minibatch_size     (module global 1250)
STEP = 1e-4          # Reaction step (Process_new default step=0.0001)
SCOUNT = 2
PCOUNT = 2


def _sim_kernel(its_ref, x_ref, sub1_ref, sub2_ref, delta_ref, x_out_ref):
    """Serial iteration/reaction loop on one batch tile.

    Layout: metabolites on sublanes, batch on lanes (lane-dense).
      its:        (1, Bt) int32   per-sample iteration budget
      x:          (M, Bt) f32     concentrations
      sub1/sub2:  (M, R)  f32     one-hot substrate-index masks (scount == 2)
      delta:      (M, R)  f32     prod - sub stoichiometry
    """
    x = x_ref[...]
    its = its_ref[...]
    sub1 = sub1_ref[...]
    sub2 = sub2_ref[...]
    sdelta = STEP * delta_ref[...]          # hoisted: step * (prod - sub), computed once
    n_react = sub1.shape[1]

    def iteration_body(i, x_cur):
        y = x_cur
        # Unrolled reaction chain (R is static).  EUP-free mass-action rate:
        #   rate_r = prod_j y_j ** sub_rj == y[j1] * y[j2]   (scount == 2)
        # realized as two masked sublane add-reduces (no pow, no product reduce).
        for r in range(n_react):
            e1 = sub1[:, r:r + 1]                                   # (M, 1)
            e2 = sub2[:, r:r + 1]                                   # (M, 1)
            d = sdelta[:, r:r + 1]                                  # (M, 1)
            xa = jnp.sum(y * e1, axis=0, keepdims=True)             # (1, Bt)
            xb = jnp.sum(y * e2, axis=0, keepdims=True)             # (1, Bt)
            y = y + (xa * xb) * d                                   # (M, Bt)
        # Per-sample gate: a select instead of the arithmetic blend so an
        # inactive sample can never be poisoned by NaN/Inf from y.
        return jnp.where(its > i, y, x_cur)

    x_out_ref[...] = lax.fori_loop(0, ITERATIONS, iteration_body, x)


def _corr_kernel(x_ref, c_ref):
    """correlation_matrix over the batch (lane) axis of x^T with shape (M, B)."""
    xt = x_ref[...].astype(jnp.float32)
    vb = xt - jnp.mean(xt, axis=1, keepdims=True)                   # (M, B)
    # NOTE: matches torch semantics — a zero-variance metabolite gives inf here.
    mr = lax.rsqrt(jnp.sum(vb * vb, axis=1, keepdims=True))         # (M, 1)
    vbn = vb * mr                                                   # fused normalization
    # corr = vbn @ vbn.T : contract the batch axis of both operands in one MXU
    # pass, no materialized transpose and no second matmul.
    c_ref[...] = lax.dot_general(
        vbn, vbn,
        dimension_numbers=(((1,), (1,)), ((), ())),
        preferred_element_type=jnp.float32)


def process_new_forward(x, iterations_for_sample, sub, prod, sub1, sub2):
    """x: (B, M) f32; its: (B,) i32; sub/prod/sub1/sub2: (R, M) f32 -> (x_out (B,M), corr (M,M))."""
    B, M = x.shape
    R = sub.shape[0]

    # Layout plumbing (outside the kernel): put batch on the lane axis.
    x_t = jnp.asarray(x, jnp.float32).T                      # (M, B)
    its_t = iterations_for_sample.reshape(1, B).astype(jnp.int32)
    sub1_t = jnp.asarray(sub1, jnp.float32).T                # (M, R)
    sub2_t = jnp.asarray(sub2, jnp.float32).T                # (M, R)
    delta_t = jnp.asarray(prod - sub, jnp.float32).T         # (M, R)

    # Batch tiling: embarrassingly parallel over batch -> "parallel" grid axis
    # (shards across the 2 TensorCores on v7x; single tile at demo sizes).
    if B > 256 and B % 256 == 0:
        b_tile = 256
    else:
        b_tile = B
    grid = (B // b_tile,)

    x_out_t = pl.pallas_call(
        _sim_kernel,
        out_shape=jax.ShapeDtypeStruct((M, B), jnp.float32),
        grid=grid,
        in_specs=[
            pl.BlockSpec((1, b_tile), lambda i: (0, i)),     # its
            pl.BlockSpec((M, b_tile), lambda i: (0, i)),     # x
            pl.BlockSpec((M, R), lambda i: (0, 0)),          # sub1 one-hot
            pl.BlockSpec((M, R), lambda i: (0, 0)),          # sub2 one-hot
            pl.BlockSpec((M, R), lambda i: (0, 0)),          # prod - sub
        ],
        out_specs=pl.BlockSpec((M, b_tile), lambda i: (0, i)),
        compiler_params=pltpu.CompilerParams(
            dimension_semantics=("parallel",)),
    )(its_t, x_t, sub1_t, sub2_t, delta_t)

    corr = pl.pallas_call(
        _corr_kernel,
        out_shape=jax.ShapeDtypeStruct((M, M), jnp.float32),
        grid=(1,),
        in_specs=[pl.BlockSpec((M, B), lambda i: (0, 0))],
        out_specs=pl.BlockSpec((M, M), lambda i: (0, 0)),
        compiler_params=pltpu.CompilerParams(
            dimension_semantics=("arbitrary",)),
    )(x_out_t)

    return x_out_t.T, corr


def make_reaction_params(key):
    """Deterministic stand-in for Generator.get_reactions_tensor (scount=pcount=2)."""
    k_sub, k_prod = jax.random.split(key)
    sub_idx = jax.random.randint(k_sub, (R_COUNT, SCOUNT), 0, M_COUNT)
    prod_idx = jax.random.randint(k_prod, (R_COUNT, PCOUNT), 0, M_COUNT)
    sub_oh = jax.nn.one_hot(sub_idx, M_COUNT, dtype=jnp.float32)    # (R, 2, M)
    prod_oh = jax.nn.one_hot(prod_idx, M_COUNT, dtype=jnp.float32)  # (R, 2, M)
    sub = sub_oh.sum(axis=1)                                        # (R, M) dense stoich
    prod = prod_oh.sum(axis=1)                                      # (R, M)
    sub1 = sub_oh[:, 0, :]                                          # (R, M) one-hot
    sub2 = sub_oh[:, 1, :]                                          # (R, M) one-hot
    return sub, prod, sub1, sub2


if __name__ == "__main__":
    key = jax.random.PRNGKey(0)
    k_params, k_x, k_its = jax.random.split(key, 3)

    sub, prod, sub1, sub2 = make_reaction_params(k_params)

    # keep concentrations strictly positive so the mass-action rates are well behaved
    x = jax.random.uniform(k_x, (MINIBATCH, M_COUNT), dtype=jnp.float32,
                           minval=0.5, maxval=1.5)
    # iterations_for_sample = randint(0, iterations, (minibatch,)) from the module
    iterations_for_sample = jax.random.randint(
        k_its, (MINIBATCH,), 0, ITERATIONS).astype(jnp.int32)

    x_out, corr = process_new_forward(x, iterations_for_sample,
                                      sub, prod, sub1, sub2)
    jax.block_until_ready((x_out, corr))

    assert x_out.shape == (MINIBATCH, M_COUNT)
    assert corr.shape == (M_COUNT, M_COUNT)
    assert jnp.all(jnp.isfinite(x_out))
    assert jnp.all(jnp.isfinite(corr))
    print("KERNEL_OK")
</pallas_src>

<mosaic_0001>
module attributes {stable_mosaic.version = 11 : i64} {
  func.func @_sim_kernel(%arg0: i32, %arg1: memref<1x16xi32, #tpu.memory_space<vmem>>, %arg2: memref<8x16xf32, #tpu.memory_space<vmem>>, %arg3: memref<8x6xf32, #tpu.memory_space<vmem>>, %arg4: memref<8x6xf32, #tpu.memory_space<vmem>>, %arg5: memref<8x6xf32, #tpu.memory_space<vmem>>, %arg6: memref<8x16xf32, #tpu.memory_space<vmem>>) attributes {dimension_semantics = [#tpu.dimension_semantics<parallel>], iteration_bounds = array<i64: 1>, scalar_prefetch = 0 : i64, scratch_operands = 0 : i64, tpu.core_type = #tpu.core_type<tc>, window_params = [{transform_indices = @transform_0, window_bounds = array<i64: 1, 16>}, {transform_indices = @transform_1, window_bounds = array<i64: 8, 16>}, {pipeline_mode = #tpu.pipeline_mode<synchronous>, transform_indices = @transform_2, window_bounds = array<i64: 8, 6>}, {pipeline_mode = #tpu.pipeline_mode<synchronous>, transform_indices = @transform_3, window_bounds = array<i64: 8, 6>}, {pipeline_mode = #tpu.pipeline_mode<synchronous>, transform_indices = @transform_4, window_bounds = array<i64: 8, 6>}, {transform_indices = @transform_5, window_bounds = array<i64: 8, 16>}]} {
    %c0 = arith.constant 0 : index
    %c0_0 = arith.constant 0 : index
    %0 = vector.load %arg2[%c0, %c0_0] : memref<8x16xf32, #tpu.memory_space<vmem>>, vector<8x16xf32>
    %c0_1 = arith.constant 0 : index
    %c0_2 = arith.constant 0 : index
    %1 = vector.load %arg1[%c0_1, %c0_2] : memref<1x16xi32, #tpu.memory_space<vmem>>, vector<1x16xi32>
    %c0_3 = arith.constant 0 : index
    %c0_4 = arith.constant 0 : index
    %2 = vector.load %arg3[%c0_3, %c0_4] : memref<8x6xf32, #tpu.memory_space<vmem>>, vector<8x6xf32>
    %c0_5 = arith.constant 0 : index
    %c0_6 = arith.constant 0 : index
    %3 = vector.load %arg4[%c0_5, %c0_6] : memref<8x6xf32, #tpu.memory_space<vmem>>, vector<8x6xf32>
    %c0_7 = arith.constant 0 : index
    %c0_8 = arith.constant 0 : index
    %4 = vector.load %arg5[%c0_7, %c0_8] : memref<8x6xf32, #tpu.memory_space<vmem>>, vector<8x6xf32>
    %cst = arith.constant 9.99999974E-5 : f32
    %5 = vector.broadcast %cst : f32 to vector<8x6xf32>
    %6 = arith.mulf %5, %4 : vector<8x6xf32>
    %c0_i32 = arith.constant 0 : i32
    %c8_i32 = arith.constant 8 : i32
    %7 = arith.addi %c0_i32, %c8_i32 : i32
    %c1_i32 = arith.constant 1 : i32
    %8 = scf.for %arg7 = %c0_i32 to %7 step %c1_i32 iter_args(%arg8 = %0) -> (vector<8x16xf32>)  : i32 {
      %10 = vector.extract_strided_slice %2 {offsets = [0, 0], sizes = [8, 1], strides = [1, 1]} : vector<8x6xf32> to vector<8x1xf32>
      %11 = vector.extract_strided_slice %3 {offsets = [0, 0], sizes = [8, 1], strides = [1, 1]} : vector<8x6xf32> to vector<8x1xf32>
      %12 = vector.extract_strided_slice %6 {offsets = [0, 0], sizes = [8, 1], strides = [1, 1]} : vector<8x6xf32> to vector<8x1xf32>
      %13 = vector.broadcast %10 : vector<8x1xf32> to vector<8x16xf32>
      %14 = arith.mulf %arg8, %13 : vector<8x16xf32>
      %cst_12 = arith.constant dense<0.000000e+00> : vector<16xf32>
      %15 = vector.multi_reduction <add>, %14, %cst_12 [0] : vector<8x16xf32> to vector<16xf32>
      %16 = vector.shape_cast %15 : vector<16xf32> to vector<1x16xf32>
      %17 = vector.broadcast %11 : vector<8x1xf32> to vector<8x16xf32>
      %18 = arith.mulf %arg8, %17 : vector<8x16xf32>
      %cst_13 = arith.constant dense<0.000000e+00> : vector<16xf32>
      %19 = vector.multi_reduction <add>, %18, %cst_13 [0] : vector<8x16xf32> to vector<16xf32>
      %20 = vector.shape_cast %19 : vector<16xf32> to vector<1x16xf32>
      %21 = arith.mulf %16, %20 : vector<1x16xf32>
      %22 = vector.broadcast %21 : vector<1x16xf32> to vector<8x16xf32>
      %23 = vector.broadcast %12 : vector<8x1xf32> to vector<8x16xf32>
      %24 = arith.mulf %22, %23 : vector<8x16xf32>
      %25 = arith.addf %arg8, %24 : vector<8x16xf32>
      %26 = vector.extract_strided_slice %2 {offsets = [0, 1], sizes = [8, 1], strides = [1, 1]} : vector<8x6xf32> to vector<8x1xf32>
      %27 = vector.extract_strided_slice %3 {offsets = [0, 1], sizes = [8, 1], strides = [1, 1]} : vector<8x6xf32> to vector<8x1xf32>
      %28 = vector.extract_strided_slice %6 {offsets = [0, 1], sizes = [8, 1], strides = [1, 1]} : vector<8x6xf32> to vector<8x1xf32>
      %29 = vector.broadcast %26 : vector<8x1xf32> to vector<8x16xf32>
      %30 = arith.mulf %25, %29 : vector<8x16xf32>
      %cst_14 = arith.constant dense<0.000000e+00> : vector<16xf32>
      %31 = vector.multi_reduction <add>, %30, %cst_14 [0] : vector<8x16xf32> to vector<16xf32>
      %32 = vector.shape_cast %31 : vector<16xf32> to vector<1x16xf32>
      %33 = vector.broadcast %27 : vector<8x1xf32> to vector<8x16xf32>
      %34 = arith.mulf %25, %33 : vector<8x16xf32>
      %cst_15 = arith.constant dense<0.000000e+00> : vector<16xf32>
      %35 = vector.multi_reduction <add>, %34, %cst_15 [0] : vector<8x16xf32> to vector<16xf32>
      %36 = vector.shape_cast %35 : vector<16xf32> to vector<1x16xf32>
      %37 = arith.mulf %32, %36 : vector<1x16xf32>
      %38 = vector.broadcast %37 : vector<1x16xf32> to vector<8x16xf32>
      %39 = vector.broadcast %28 : vector<8x1xf32> to vector<8x16xf32>
      %40 = arith.mulf %38, %39 : vector<8x16xf32>
      %41 = arith.addf %25, %40 : vector<8x16xf32>
      %42 = vector.extract_strided_slice %2 {offsets = [0, 2], sizes = [8, 1], strides = [1, 1]} : vector<8x6xf32> to vector<8x1xf32>
      %43 = vector.extract_strided_slice %3 {offsets = [0, 2], sizes = [8, 1], strides = [1, 1]} : vector<8x6xf32> to vector<8x1xf32>
      %44 = vector.extract_strided_slice %6 {offsets = [0, 2], sizes = [8, 1], strides = [1, 1]} : vector<8x6xf32> to vector<8x1xf32>
      %45 = vector.broadcast %42 : vector<8x1xf32> to vector<8x16xf32>
      %46 = arith.mulf %41, %45 : vector<8x16xf32>
      %cst_16 = arith.constant dense<0.000000e+00> : vector<16xf32>
      %47 = vector.multi_reduction <add>, %46, %cst_16 [0] : vector<8x16xf32> to vector<16xf32>
      %48 = vector.shape_cast %47 : vector<16xf32> to vector<1x16xf32>
      %49 = vector.broadcast %43 : vector<8x1xf32> to vector<8x16xf32>
      %50 = arith.mulf %41, %49 : vector<8x16xf32>
      %cst_17 = arith.constant dense<0.000000e+00> : vector<16xf32>
      %51 = vector.multi_reduction <add>, %50, %cst_17 [0] : vector<8x16xf32> to vector<16xf32>
      %52 = vector.shape_cast %51 : vector<16xf32> to vector<1x16xf32>
      %53 = arith.mulf %48, %52 : vector<1x16xf32>
      %54 = vector.broadcast %53 : vector<1x16xf32> to vector<8x16xf32>
      %55 = vector.broadcast %44 : vector<8x1xf32> to vector<8x16xf32>
      %56 = arith.mulf %54, %55 : vector<8x16xf32>
      %57 = arith.addf %41, %56 : vector<8x16xf32>
      %58 = vector.extract_strided_slice %2 {offsets = [0, 3], sizes = [8, 1], strides = [1, 1]} : vector<8x6xf32> to vector<8x1xf32>
      %59 = vector.extract_strided_slice %3 {offsets = [0, 3], sizes = [8, 1], strides = [1, 1]} : vector<8x6xf32> to vector<8x1xf32>
      %60 = vector.extract_strided_slice %6 {offsets = [0, 3], sizes = [8, 1], strides = [1, 1]} : vector<8x6xf32> to vector<8x1xf32>
      %61 = vector.broadcast %58 : vector<8x1xf32> to vector<8x16xf32>
      %62 = arith.mulf %57, %61 : vector<8x16xf32>
      %cst_18 = arith.constant dense<0.000000e+00> : vector<16xf32>
      %63 = vector.multi_reduction <add>, %62, %cst_18 [0] : vector<8x16xf32> to vector<16xf32>
      %64 = vector.shape_cast %63 : vector<16xf32> to vector<1x16xf32>
      %65 = vector.broadcast %59 : vector<8x1xf32> to vector<8x16xf32>
      %66 = arith.mulf %57, %65 : vector<8x16xf32>
      %cst_19 = arith.constant dense<0.000000e+00> : vector<16xf32>
      %67 = vector.multi_reduction <add>, %66, %cst_19 [0] : vector<8x16xf32> to vector<16xf32>
      %68 = vector.shape_cast %67 : vector<16xf32> to vector<1x16xf32>
      %69 = arith.mulf %64, %68 : vector<1x16xf32>
      %70 = vector.broadcast %69 : vector<1x16xf32> to vector<8x16xf32>
      %71 = vector.broadcast %60 : vector<8x1xf32> to vector<8x16xf32>
      %72 = arith.mulf %70, %71 : vector<8x16xf32>
      %73 = arith.addf %57, %72 : vector<8x16xf32>
      %74 = vector.extract_strided_slice %2 {offsets = [0, 4], sizes = [8, 1], strides = [1, 1]} : vector<8x6xf32> to vector<8x1xf32>
      %75 = vector.extract_strided_slice %3 {offsets = [0, 4], sizes = [8, 1], strides = [1, 1]} : vector<8x6xf32> to vector<8x1xf32>
      %76 = vector.extract_strided_slice %6 {offsets = [0, 4], sizes = [8, 1], strides = [1, 1]} : vector<8x6xf32> to vector<8x1xf32>
      %77 = vector.broadcast %74 : vector<8x1xf32> to vector<8x16xf32>
      %78 = arith.mulf %73, %77 : vector<8x16xf32>
      %cst_20 = arith.constant dense<0.000000e+00> : vector<16xf32>
      %79 = vector.multi_reduction <add>, %78, %cst_20 [0] : vector<8x16xf32> to vector<16xf32>
      %80 = vector.shape_cast %79 : vector<16xf32> to vector<1x16xf32>
      %81 = vector.broadcast %75 : vector<8x1xf32> to vector<8x16xf32>
      %82 = arith.mulf %73, %81 : vector<8x16xf32>
      %cst_21 = arith.constant dense<0.000000e+00> : vector<16xf32>
      %83 = vector.multi_reduction <add>, %82, %cst_21 [0] : vector<8x16xf32> to vector<16xf32>
      %84 = vector.shape_cast %83 : vector<16xf32> to vector<1x16xf32>
      %85 = arith.mulf %80, %84 : vector<1x16xf32>
      %86 = vector.broadcast %85 : vector<1x16xf32> to vector<8x16xf32>
      %87 = vector.broadcast %76 : vector<8x1xf32> to vector<8x16xf32>
      %88 = arith.mulf %86, %87 : vector<8x16xf32>
      %89 = arith.addf %73, %88 : vector<8x16xf32>
      %90 = vector.extract_strided_slice %2 {offsets = [0, 5], sizes = [8, 1], strides = [1, 1]} : vector<8x6xf32> to vector<8x1xf32>
      %91 = vector.extract_strided_slice %3 {offsets = [0, 5], sizes = [8, 1], strides = [1, 1]} : vector<8x6xf32> to vector<8x1xf32>
      %92 = vector.extract_strided_slice %6 {offsets = [0, 5], sizes = [8, 1], strides = [1, 1]} : vector<8x6xf32> to vector<8x1xf32>
      %93 = vector.broadcast %90 : vector<8x1xf32> to vector<8x16xf32>
      %94 = arith.mulf %89, %93 : vector<8x16xf32>
      %cst_22 = arith.constant dense<0.000000e+00> : vector<16xf32>
      %95 = vector.multi_reduction <add>, %94, %cst_22 [0] : vector<8x16xf32> to vector<16xf32>
      %96 = vector.shape_cast %95 : vector<16xf32> to vector<1x16xf32>
      %97 = vector.broadcast %91 : vector<8x1xf32> to vector<8x16xf32>
      %98 = arith.mulf %89, %97 : vector<8x16xf32>
      %cst_23 = arith.constant dense<0.000000e+00> : vector<16xf32>
      %99 = vector.multi_reduction <add>, %98, %cst_23 [0] : vector<8x16xf32> to vector<16xf32>
      %100 = vector.shape_cast %99 : vector<16xf32> to vector<1x16xf32>
      %101 = arith.mulf %96, %100 : vector<1x16xf32>
      %102 = vector.broadcast %101 : vector<1x16xf32> to vector<8x16xf32>
      %103 = vector.broadcast %92 : vector<8x1xf32> to vector<8x16xf32>
      %104 = arith.mulf %102, %103 : vector<8x16xf32>
      %105 = arith.addf %89, %104 : vector<8x16xf32>
      %106 = vector.broadcast %arg7 : i32 to vector<1x16xi32>
      %107 = arith.cmpi sgt, %1, %106 : vector<1x16xi32>
      %108 = vector.shape_cast %107 : vector<1x16xi1> to vector<1x16xi1>
      %109 = vector.broadcast %108 : vector<1x16xi1> to vector<8x16xi1>
      %110 = arith.select %109, %105, %arg8 : vector<8x16xi1>, vector<8x16xf32>
      scf.yield %110 : vector<8x16xf32>
    }
    %c8_i32_9 = arith.constant 8 : i32
    %c0_10 = arith.constant 0 : index
    %c0_11 = arith.constant 0 : index
    %9 = vector.load %arg6[%c0_10, %c0_11] : memref<8x16xf32, #tpu.memory_space<vmem>>, vector<8x16xf32>
    tpu.vector_store %arg6[%c0_10, %c0_11], %8 {strides = array<i32>} : memref<8x16xf32, #tpu.memory_space<vmem>>, vector<8x16xf32>,
    return
  }
  func.func @transform_0(%arg0: i32) -> (i32, i32) {
    %c0_i32 = arith.constant 0 : i32
    %c0_i32_0 = arith.constant 0 : i32
    return %c0_i32, %arg0 : i32, i32
  }
  func.func @transform_1(%arg0: i32) -> (i32, i32) {
    %c0_i32 = arith.constant 0 : i32
    %c0_i32_0 = arith.constant 0 : i32
    return %c0_i32, %arg0 : i32, i32
  }
  func.func @transform_2(%arg0: i32) -> (i32, i32) {
    %c0_i32 = arith.constant 0 : i32
    %c0_i32_0 = arith.constant 0 : i32
    %c0_i32_1 = arith.constant 0 : i32
    return %c0_i32, %c0_i32_0 : i32, i32
  }
  func.func @transform_3(%arg0: i32) -> (i32, i32) {
    %c0_i32 = arith.constant 0 : i32
    %c0_i32_0 = arith.constant 0 : i32
    %c0_i32_1 = arith.constant 0 : i32
    return %c0_i32, %c0_i32_0 : i32, i32
  }
  func.func @transform_4(%arg0: i32) -> (i32, i32) {
    %c0_i32 = arith.constant 0 : i32
    %c0_i32_0 = arith.constant 0 : i32
    %c0_i32_1 = arith.constant 0 : i32
    return %c0_i32, %c0_i32_0 : i32, i32
  }
  func.func @transform_5(%arg0: i32) -> (i32, i32) {
    %c0_i32 = arith.constant 0 : i32
    %c0_i32_0 = arith.constant 0 : i32
    return %c0_i32, %arg0 : i32, i32
  }
}

</mosaic_0001>

<bundles_post_ra>
// kernel: tpu_custom_call.1
= control target key start
LH: loop header
LB: loop body
LE: loop exit
PB: predicated region body
PF: predicated region fallthrough
CT: control target
= control target key end

     0   :  { %10 = vsyncpa [#allocation3], 0  ;;  %s647_s0 = inlined_call_operand.hbm [shape: s32[1,16], index: 0, kind: input, shape index: {}]   ;;  %s648_s1 = inlined_call_operand.hbm [shape: f32[8,16], index: 1, kind: input, shape index: {}]   ;;  %s649_s2 = inlined_call_operand.hbm [shape: f32[8,6], index: 2, kind: input, shape index: {}]   ;;  %s650_s3 = inlined_call_operand.vmem [shape: f32[8,6], index: 3, kind: input, shape index: {}]   ;;  %s651_s4 = inlined_call_operand.hbm [shape: f32[8,6], index: 4, kind: input, shape index: {}]   ;;  %s652_s5 = inlined_call_operand.hbm [shape: f32[8,16], index: 5, kind: output, shape index: {}]  }
   0x1   :  { %11 = vsyncpa [#allocation6], 0 }
   0x2   :  { %12 = vsyncpa [#allocation9], 0 }
   0x3   :  { %13 = vsyncpa [#allocation4], 0  ;;  %s480_s18 = smov [#allocation5]   ;;  %s481_s20 = smov [#allocation2]  }
   0x4   :  { %s30_s19 = sshll.u32 %s480_s18, 4  ;;  %s20_s21 = sshll.u32 %s481_s20, 4  ;;  %s31_s19 = int_to_ptr.vmem [resolvable:$true] %s30_s19  ;;  %s21_s21 = int_to_ptr.vmem [resolvable:$true] %s20_s21 }
   0x5   :  { %s346_s24 = scalar_lea.hbm %s648_s1, 128 }
   0x6   :  { %p347_p0 = scmp.ne.s32.totalorder %s648_s1, %s346_s24  ;;  %p350_p1 = scmp.lt.u32.totalorder %s346_s24, %s648_s1 }
   0x8   :  { %p352_p2 = pnand %p350_p1, %p347_p0 }
   0xa   :  { %355 = shalt.err (!%p352_p2)
}
   0xb   :  { %s356_s29 = scalar_lea.vmem %s31_s19, 128  ;;  %p361_p4 = scmp.lt.s32.totalorder %s31_s19, %s31_s19 }
   0xc   :  { %p357_p3 = scmp.ne.s32.totalorder %s31_s19, %s356_s29  ;;  %p362_p5 = scmp.lt.s32.totalorder %s356_s29, %s356_s29 }
   0xe   :  { %p363_p6 = por %p362_p5, %p361_p4 }
  0x10   :  { %p364_p7 = pnand %p363_p6, %p357_p3 }
  0x12   :  { %367 = shalt.err (!%p364_p7)
}
  0x13   :  { %33 = dma.hbm_to_vmem [thread:$0]  %s648_s1, 128, %s31_s19, [#allocation6]  }
  0x14   :  { %s368_s9 = scalar_lea.hbm %s647_s0, 16 }
  0x15   :  { %p369_p8 = scmp.ne.s32.totalorder %s647_s0, %s368_s9  ;;  %p372_p9 = scmp.lt.u32.totalorder %s368_s9, %s647_s0 }
  0x17   :  { %p374_p10 = pnand %p372_p9, %p369_p8 }
  0x19   :  { %377 = shalt.err (!%p374_p10)
}
  0x1a   :  { %s378_s14 = scalar_lea.vmem %s21_s21, 16  ;;  %s382_s15 = scalar_lea.vmem %s21_s21, 32 }
  0x1b   :  { %p379_p11 = scmp.ne.s32.totalorder %s21_s21, %s378_s14  ;;  %p383_p12 = scmp.lt.s32.totalorder %s21_s21, %s21_s21 }
  0x1c   :  { %p384_p13 = scmp.lt.s32.totalorder %s382_s15, %s378_s14 }
  0x1e   :  { %p385_p0 = por %p384_p13, %p383_p12 }
  0x20   :  { %p386_p1 = pnand %p385_p0, %p379_p11 }
  0x22   :  { %389 = shalt.err (!%p386_p1)
}
  0x23   :  { %23 = dma.hbm_to_vmem [thread:$0]  %s647_s0, 16, %s21_s21, [#allocation3]  }
  0x24   :  { %s482_s17 = smov [#allocation7]   ;;  %s483_s19 = smov [#allocation8]  }
  0x25   :  { %s40_s18 = sshll.u32 %s482_s17, 4  ;;  %s52_s20 = sshll.u32 %s483_s19, 4  ;;  %s41_s18 = int_to_ptr.vmem [resolvable:$true] %s40_s18  ;;  %s53_s20 = int_to_ptr.vmem [resolvable:$true] %s52_s20 }
  0x26   :  { %s390_s24 = scalar_lea.hbm %s649_s2, 128 }
  0x27   :  { %p391_p2 = scmp.ne.s32.totalorder %s649_s2, %s390_s24  ;;  %p394_p3 = scmp.lt.u32.totalorder %s390_s24, %s649_s2 }
  0x29   :  { %p396_p4 = pnand %p394_p3, %p391_p2 }
  0x2b   :  { %399 = shalt.err (!%p396_p4)
}
  0x2c   :  { %s400_s0 = scalar_lea.vmem %s41_s18, 128  ;;  %p405_p6 = scmp.lt.s32.totalorder %s41_s18, %s41_s18 }
  0x2d   :  { %p401_p5 = scmp.ne.s32.totalorder %s41_s18, %s400_s0  ;;  %p406_p7 = scmp.lt.s32.totalorder %s400_s0, %s400_s0 }
  0x2f   :  { %p407_p8 = por %p406_p7, %p405_p6 }
  0x31   :  { %p408_p9 = pnand %p407_p8, %p401_p5 }
  0x33   :  { %411 = shalt.err (!%p408_p9)
}
  0x34   :  { %43 = dma.hbm_to_vmem [thread:$0]  %s649_s2, 128, %s41_s18, [#allocation6]  }
  0x35   :  { %s412_s7 = scalar_lea.hbm %s651_s4, 128 }
  0x36   :  { %p413_p10 = scmp.ne.s32.totalorder %s651_s4, %s412_s7  ;;  %p416_p11 = scmp.lt.u32.totalorder %s412_s7, %s651_s4 }
  0x38   :  { %p418_p12 = pnand %p416_p11, %p413_p10 }
  0x3a   :  { %421 = shalt.err (!%p418_p12)
}
  0x3b   :  { %s422_s12 = scalar_lea.vmem %s53_s20, 128  ;;  %p427_p0 = scmp.lt.s32.totalorder %s53_s20, %s53_s20 }
  0x3c   :  { %p423_p13 = scmp.ne.s32.totalorder %s53_s20, %s422_s12  ;;  %p428_p1 = scmp.lt.s32.totalorder %s422_s12, %s422_s12 }
  0x3e   :  { %p429_p2 = por %p428_p1, %p427_p0 }
  0x40   :  { %p430_p3 = pnand %p429_p2, %p423_p13 }
  0x42   :  { %433 = shalt.err (!%p430_p3)
}
  0x43   :  { %55 = dma.hbm_to_vmem [thread:$0]  %s651_s4, 128, %s53_s20, [#allocation9]  }
  0x44   :  { %464 = dma.done.wait [#allocation3], 16  }
  0x45   :  { %465 = vsyncadd [#allocation3], 4294967280 }
  0x46   :  { %466 = dma.done.wait [#allocation6], 256  }
  0x47   :  { %467 = vsyncadd [#allocation6], 4294967040 }
  0x48   :  { %468 = dma.done.wait [#allocation9], 128  }
  0x49   :  { %469 = vsyncadd [#allocation9], 4294967168  ;;  %v68_v0 = vld [vmem:[#allocation5] sm:$0xff]   ;;  %v569_v1 = vld [vmem:[#allocation2] sm:$0x1]  ;;  %s582_s4 = smov 0  }
  0x4a   :  { %v571_v2 = vld [vmem:[#allocation7] sm:$0xff]  ;;  %v576_v3 = vld [vmem:[%s650_s3] sm:$0xff] }
  0x4b   :  { %v72_v4 = vld [vmem:[#allocation8] sm:$0xff] }
  0x4c   :  { %v578_v5 = vmul.f32 0.0001, %v72_v4 }
  0x4d LB: > { %v484_v6 = vmov 0   ;;  %v485_v7 = vmov 1   ;;  %v486_v8 = vmov 2   ;;  %v487_v9 = vmov 3   ;;  %s478_s4 = sphi %s582_s4, %s79_s4   ;;  %v474_v0 = vphi %v68_v0, %v653_v0  }
  0x4e   : > { %334 = vset.pattern.permute.xlu0 %v484_v6  ;;  %335 = vset.pattern.permute.xlu1 %v484_v6  ;;  %v488_v10 = vmov 4   ;;  %v489_v11 = vmov 5   ;;  %vm87_vm0 = vcmask 130048  }
  0x4f   : > { %83 = vperm.xlu0 %334, %v571_v2   ;;  %111 = vperm.xlu1 %335, %v578_v5  }
  0x53   : > { %97 = vperm.xlu0 %334, %v576_v3   ;;  %336 = vset.pattern.permute.xlu1 %v485_v7 }
  0x54   : > { %117 = vperm.xlu1 %336, %v571_v2  }
  0x57   : > { %337 = vset.pattern.permute.xlu0 %v485_v7 }
  0x58   : > { %142 = vperm.xlu1 %336, %v578_v5   ;;  %129 = vperm.xlu0 %337, %v576_v3  }
  0x5c   : > { %338 = vset.pattern.permute.xlu1 %v486_v8  ;;  %339 = vset.pattern.permute.xlu0 %v486_v8 }
  0x5d   : > { %148 = vperm.xlu1 %338, %v571_v2   ;;  %160 = vperm.xlu0 %339, %v576_v3  }
  0x61   : > { %173 = vperm.xlu1 %338, %v578_v5   ;;  %341 = vset.pattern.permute.xlu0 %v487_v9 }
  0x62   : > { %191 = vperm.xlu0 %341, %v576_v3  }
  0x65   : > { %340 = vset.pattern.permute.xlu1 %v487_v9 }
  0x66   : > { %179 = vperm.xlu1 %340, %v571_v2   ;;  %343 = vset.pattern.permute.xlu0 %v488_v10 }
  0x67   : > { %222 = vperm.xlu0 %343, %v576_v3  }
  0x6a   : > { %204 = vperm.xlu1 %340, %v578_v5  }
  0x6b   : > { %345 = vset.pattern.permute.xlu0 %v489_v11 }
  0x6c   : > { %253 = vperm.xlu0 %345, %v576_v3  }
  0x6e   : > { %342 = vset.pattern.permute.xlu1 %v488_v10 }
  0x6f   : > { %210 = vperm.xlu1 %342, %v571_v2  }
  0x73   : > { %235 = vperm.xlu1 %342, %v578_v5  }
  0x77   : > { %344 = vset.pattern.permute.xlu1 %v489_v11 }
  0x78   : > { %241 = vperm.xlu1 %344, %v571_v2  }
  0x7c   : > { %266 = vperm.xlu1 %344, %v578_v5  }
  0xce   : > { %v84_v12 = vpop.permute.xlu0 %83  ;;  %v112_v30 = vpop.permute.xlu1 %111 }
  0xcf   : > { %v86_v13 = vmul.f32 %v474_v0, %v84_v12 }
  0xd1   : > { %v88_v14 = vsel %vm87_vm0, %v86_v13, 0.0 }
  0xd2   : > { %v89_v15 = vrot.slane %v88_v14, 4  ;;  %v98_v16 = vpop.permute.xlu0 %97 }
  0xd3   : > { %v100_v17 = vmul.f32 %v474_v0, %v98_v16  ;;  %v118_v35 = vpop.permute.xlu1 %117 }
  0xd4   : > { %v90_v18 = vadd.f32 %v89_v15, %v88_v14 }
  0xd5   : > { %v101_v19 = vsel %vm87_vm0, %v100_v17, 0.0 }
  0xd6   : > { %v91_v20 = vrot.slane %v90_v18, 2  ;;  %v102_v21 = vrot.slane %v101_v19, 4 }
  0xd7   : > { %v130_v33 = vpop.permute.xlu0 %129  ;;  %v143_v53 = vpop.permute.xlu1 %142 }
  0xd8   : > { %v92_v22 = vadd.f32 %v91_v20, %v90_v18  ;;  %v103_v23 = vadd.f32 %v102_v21, %v101_v19 }
  0xda   : > { %v104_v24 = vrot.slane %v103_v23, 2  ;;  %v93_v26 = vrot.slane %v92_v22, 1 }
  0xdc   : > { %v105_v25 = vadd.f32 %v104_v24, %v103_v23  ;;  %v94_v28 = vadd.f32 %v93_v26, %v92_v22  ;;  %v161_v55 = vpop.permute.xlu0 %160  ;;  %v149_v57 = vpop.permute.xlu1 %148 }
  0xde   : > { %v106_v27 = vrot.slane %v105_v25, 1 }
  0xe0   : > { %v107_v29 = vadd.f32 %v106_v27, %v105_v25  ;;  %v174_v17 = vpop.permute.xlu1 %173 }
  0xe1   : > { %v192_v19 = vpop.permute.xlu0 %191 }
  0xe2   : > { %v108_v31 = vmul.f32 %v107_v29, %v94_v28 }
  0xe4   : > { %v114_v32 = vmul.f32 %v112_v30, %v108_v31 }
  0xe5   : > { %v180_v21 = vpop.permute.xlu1 %179 }
  0xe6   : > { %v115_v34 = vadd.f32 %v474_v0, %v114_v32 }
  0xe8   : > { %v120_v36 = vmul.f32 %v118_v35, %v115_v34  ;;  %v132_v37 = vmul.f32 %v130_v33, %v115_v34 }
  0xea   : > { %v121_v38 = vsel %vm87_vm0, %v120_v36, 0.0  ;;  %v133_v39 = vsel %vm87_vm0, %v132_v37, 0.0 }
  0xeb   : > { %v122_v40 = vrot.slane %v121_v38, 4  ;;  %v134_v41 = vrot.slane %v133_v39, 4 }
  0xed   : > { %v123_v42 = vadd.f32 %v122_v40, %v121_v38  ;;  %v135_v43 = vadd.f32 %v134_v41, %v133_v39  ;;  %v205_v39 = vpop.permute.xlu1 %204  ;;  %v223_v41 = vpop.permute.xlu0 %222 }
  0xef   : > { %v124_v44 = vrot.slane %v123_v42, 2  ;;  %v136_v45 = vrot.slane %v135_v43, 2 }
  0xf1   : > { %v125_v46 = vadd.f32 %v124_v44, %v123_v42  ;;  %v137_v47 = vadd.f32 %v136_v45, %v135_v43  ;;  %v211_v43 = vpop.permute.xlu1 %210 }
  0xf3   : > { %v126_v48 = vrot.slane %v125_v46, 1  ;;  %v138_v49 = vrot.slane %v137_v47, 1 }
  0xf5   : > { %v127_v50 = vadd.f32 %v126_v48, %v125_v46  ;;  %v139_v51 = vadd.f32 %v138_v49, %v137_v47 }
  0xf7   : > { %v140_v52 = vmul.f32 %v139_v51, %v127_v50 }
  0xf9   : > { %v145_v54 = vmul.f32 %v143_v53, %v140_v52 }
  0xfb   : > { %v146_v56 = vadd.f32 %v145_v54, %v115_v34 }
  0xfd   : > { %v151_v58 = vmul.f32 %v149_v57, %v146_v56  ;;  %v163_v59 = vmul.f32 %v161_v55, %v146_v56 }
  0xff   : > { %v152_v60 = vsel %vm87_vm0, %v151_v58, 0.0  ;;  %v164_v61 = vsel %vm87_vm0, %v163_v59, 0.0 }
 0x100   : > { %v153_v62 = vrot.slane %v152_v60, 4  ;;  %v165_v63 = vrot.slane %v164_v61, 4 }
 0x102   : > { %v154_v4 = vadd.f32 %v153_v62, %v152_v60  ;;  %v166_v7 = vadd.f32 %v165_v63, %v164_v61  ;;  %v236_v61 = vpop.permute.xlu1 %235  ;;  %v254_v63 = vpop.permute.xlu0 %253 }
 0x104   : > { %v155_v8 = vrot.slane %v154_v4, 2  ;;  %v167_v9 = vrot.slane %v166_v7, 2 }
 0x106   : > { %v156_v10 = vadd.f32 %v155_v8, %v154_v4  ;;  %v168_v11 = vadd.f32 %v167_v9, %v166_v7  ;;  %v242_v7 = vpop.permute.xlu1 %241 }
 0x108   : > { %v157_v12 = vrot.slane %v156_v10, 1  ;;  %v169_v13 = vrot.slane %v168_v11, 1 }
 0x10a   : > { %v158_v14 = vadd.f32 %v157_v12, %v156_v10  ;;  %v170_v15 = vadd.f32 %v169_v13, %v168_v11  ;;  %v274_v10 = vlaneseq }
 0x10c   : > { %v171_v16 = vmul.f32 %v170_v15, %v158_v14  ;;  %v271_v15 = vstv %s478_s4  ;;  %s79_s4 = sadd.s32 1, %s478_s4  }
 0x10d   : > { %vm272_vm1 = vcmp.gt.s32.totalorder %v569_v1, %v271_v15  ;;  %p76_p4 = scmp.ge.s32.totalorder %s79_s4, 8  }
 0x10e   : > { %v176_v18 = vmul.f32 %v174_v17, %v171_v16  ;;  %s490_s3 = smov (%p76_p4), [#allocation10]  }
 0x10f   :  { %s288_s1 = sshll.u32 (%p76_p4), %s490_s3, 4  ;;  %s289_s1 = int_to_ptr.vmem [resolvable:$true] %s288_s1 }
 0x110   : > { %v177_v20 = vadd.f32 %v176_v18, %v146_v56  ;;  %v275_v18 = vshrl.u32 %v274_v10, 7  ;;  %s434_s16 = scalar_lea.vmem (%p76_p4), %s289_s1, 128  ;;  %p439_p6 = scmp.lt.s32.totalorder (%p76_p4), %s289_s1, %s289_s1 }
 0x111   :  { %p435_p5 = scmp.ne.s32.totalorder (%p76_p4), %s289_s1, %s434_s16  ;;  %p440_p7 = scmp.lt.s32.totalorder (%p76_p4), %s434_s16, %s434_s16 }
 0x112   : > { %v182_v22 = vmul.f32 %v180_v21, %v177_v20  ;;  %v194_v23 = vmul.f32 %v192_v19, %v177_v20 }
 0x113   :  { %p441_p8 = por (%p76_p4), %p440_p7, %p439_p6 }
 0x114   : > { %v183_v24 = vsel %vm87_vm0, %v182_v22, 0.0  ;;  %v195_v25 = vsel %vm87_vm0, %v194_v23, 0.0  ;;  %v276_v23 = vsub.s32 0, %v275_v18 }
 0x115   : > { %v184_v26 = vrot.slane %v183_v24, 4  ;;  %v196_v27 = vrot.slane %v195_v25, 4  ;;  %p442_p9 = pnand (%p76_p4), %p441_p8, %p435_p5 }
 0x117   : > { %v185_v28 = vadd.f32 %v184_v26, %v183_v24  ;;  %v197_v29 = vadd.f32 %v196_v27, %v195_v25  ;;  %v273_v24 = vsel %vm272_vm1, 1, %v484_v6 }
 0x119   : > { %v186_v30 = vrot.slane %v185_v28, 2  ;;  %v198_v31 = vrot.slane %v197_v29, 2 }
 0x11b   : > { %v187_v32 = vadd.f32 %v186_v30, %v185_v28  ;;  %v199_v33 = vadd.f32 %v198_v31, %v197_v29  ;;  %v277_v29 = vrot.slane %v273_v24, %v276_v23  ;;  %v267_v31 = vpop.permute.xlu1 %266 }
 0x11d   : > { %v188_v34 = vrot.slane %v187_v32, 1  ;;  %v200_v35 = vrot.slane %v199_v33, 1  ;;  %vm278_vm2 = vcmp.eq.s32.totalorder %v277_v29, 1 }
 0x11f   : > { %v189_v36 = vadd.f32 %v188_v34, %v187_v32  ;;  %v201_v37 = vadd.f32 %v200_v35, %v199_v33 }
 0x121   : > { %v202_v38 = vmul.f32 %v201_v37, %v189_v36 }
 0x123   : > { %v207_v40 = vmul.f32 %v205_v39, %v202_v38 }
 0x125   : > { %v208_v42 = vadd.f32 %v207_v40, %v177_v20 }
 0x127   : > { %v213_v44 = vmul.f32 %v211_v43, %v208_v42  ;;  %v225_v45 = vmul.f32 %v223_v41, %v208_v42 }
 0x129   : > { %v214_v46 = vsel %vm87_vm0, %v213_v44, 0.0  ;;  %v226_v47 = vsel %vm87_vm0, %v225_v45, 0.0 }
 0x12a   : > { %v215_v48 = vrot.slane %v214_v46, 4  ;;  %v227_v49 = vrot.slane %v226_v47, 4 }
 0x12c   : > { %v216_v50 = vadd.f32 %v215_v48, %v214_v46  ;;  %v228_v51 = vadd.f32 %v227_v49, %v226_v47 }
 0x12e   : > { %v217_v52 = vrot.slane %v216_v50, 2  ;;  %v229_v53 = vrot.slane %v228_v51, 2 }
 0x130   : > { %v218_v54 = vadd.f32 %v217_v52, %v216_v50  ;;  %v230_v55 = vadd.f32 %v229_v53, %v228_v51 }
 0x132   : > { %v219_v56 = vrot.slane %v218_v54, 1  ;;  %v231_v57 = vrot.slane %v230_v55, 1 }
 0x134   : > { %v220_v58 = vadd.f32 %v219_v56, %v218_v54  ;;  %v232_v59 = vadd.f32 %v231_v57, %v230_v55 }
 0x136   : > { %v233_v60 = vmul.f32 %v232_v59, %v220_v58 }
 0x138   : > { %v238_v62 = vmul.f32 %v236_v61, %v233_v60 }
 0x13a   : > { %v239_v4 = vadd.f32 %v238_v62, %v208_v42 }
 0x13c   : > { %v244_v8 = vmul.f32 %v242_v7, %v239_v4  ;;  %v256_v9 = vmul.f32 %v254_v63, %v239_v4 }
 0x13e   : > { %v245_v11 = vsel %vm87_vm0, %v244_v8, 0.0  ;;  %v257_v12 = vsel %vm87_vm0, %v256_v9, 0.0 }
 0x13f   : > { %v246_v13 = vrot.slane %v245_v11, 4  ;;  %v258_v14 = vrot.slane %v257_v12, 4 }
 0x141   : > { %v247_v16 = vadd.f32 %v246_v13, %v245_v11  ;;  %v259_v17 = vadd.f32 %v258_v14, %v257_v12 }
 0x143   : > { %v248_v19 = vrot.slane %v247_v16, 2  ;;  %v260_v20 = vrot.slane %v259_v17, 2 }
 0x145   : > { %v249_v21 = vadd.f32 %v248_v19, %v247_v16  ;;  %v261_v22 = vadd.f32 %v260_v20, %v259_v17 }
 0x147   : > { %v250_v25 = vrot.slane %v249_v21, 1  ;;  %v262_v26 = vrot.slane %v261_v22, 1 }
 0x149   : > { %v251_v27 = vadd.f32 %v250_v25, %v249_v21  ;;  %v263_v28 = vadd.f32 %v262_v26, %v261_v22 }
 0x14b   : > { %v264_v30 = vmul.f32 %v263_v28, %v251_v27 }
 0x14c   :  { %78 = sbr.rel (!%p76_p4) target bundleno = 77 (0x4d), region = 63 }
 0x14d   : > { %v269_v32 = vmul.f32 %v267_v31, %v264_v30 }
 0x14f   : > { %v270_v33 = vadd.f32 %v269_v32, %v239_v4 }
 0x151   : > { %v279_v34 = vsel %vm278_vm2, %v270_v33, %v474_v0  }
 0x152   : > { %v653_v0 = vmov %v279_v34  ;;  %281 = vst.msk [vmem:[#allocation10] sm:$0xff] (%p76_p4), %vm87_vm0, %v279_v34 }
 0x153   :  { %445 = shalt.err (!%p442_p9)
}
 0x154   :  { %s446_s19 = scalar_lea.hbm %s652_s5, 128 }
 0x155   :  { %p447_p10 = scmp.ne.s32.totalorder %s652_s5, %s446_s19  ;;  %p450_p11 = scmp.lt.u32.totalorder %s446_s19, %s652_s5 }
 0x157   :  { %p452_p12 = pnand %p450_p11, %p447_p10 }
 0x159   :  { %455 = shalt.err (!%p452_p12)
}
 0x15a   :  { %291 = dma.vmem_to_hbm [thread:$0]  %s289_s1, 128, %s652_s5, [#allocation4]  }
 0x15b   :  { %470 = dma.done.wait [#allocation4], 128  }
 0x15c   :  { %471 = vsyncadd [#allocation4], 4294967168 }
 0x15d   :  { %295 = vsyncpa [#allocation3], 1 }
 0x15e   :  { %296 = vsyncpa [#allocation6], 1 }
 0x15f   :  { %297 = vsyncpa [#allocation9], 1 }
 0x160   :  { %298 = vsyncpa [#allocation4], 1 }

</bundles_post_ra>
